<compile_context>
chip_gen: v5e
topology: v5e:2x2
jax: 0.10.0
libtpu: 0.0.40
codegen_flags: <defaults>
</compile_context>

<pallas_src>
import jax
import jax.numpy as jnp
from jax.experimental import pallas as pl
from jax.experimental.pallas import tpu as pltpu

# Logical hyper_stack dims.
IN_F = 32     # hyper_x feature dim
HID = 64      # hidden width
OUT_F = 16    # generated-parameter chunk dim
BATCH = 256   # number of hyper inputs evaluated per call

# MXU / lane-aligned padded dims.
TILE_B = 128  # batch rows per grid step (fills MXU M dimension)
IN_P = 128
HID_P = 128
OUT_P = 128


def hyper_stack_kernel(x_ref, w1_ref, b1_ref, w2_ref, b2_ref, w3_ref, b3_ref,
                       o_ref):
    """Fused 3-layer MLP: (Linear -> ReLU) x2 -> Linear on one 128-row tile.

    x_ref: (TILE_B, IN_P) bf16, weights bf16 (resident), biases f32,
    o_ref: (TILE_B, OUT_P) f32 lane-dense output slab.
    """
    x = x_ref[...]

    h1 = jnp.dot(x, w1_ref[...], preferred_element_type=jnp.float32)
    h1 = jnp.maximum(h1 + b1_ref[...], 0.0).astype(jnp.bfloat16)

    h2 = jnp.dot(h1, w2_ref[...], preferred_element_type=jnp.float32)
    h2 = jnp.maximum(h2 + b2_ref[...], 0.0).astype(jnp.bfloat16)

    h3 = jnp.dot(h2, w3_ref[...], preferred_element_type=jnp.float32)
    o_ref[...] = (h3 + b3_ref[...]).astype(o_ref.dtype)


def _pad2(a, rows, cols):
    r, c = a.shape
    return jnp.pad(a, ((0, rows - r), (0, cols - c)))


@jax.jit
def hyper_model_forward(hyper_x, params):
    """Mirrors HyperModel.forward(hyper_x) = hyper_stack(hyper_x)."""
    w1, b1, w2, b2, w3, b3 = params
    B = hyper_x.shape[0]
    B_pad = pl.cdiv(B, TILE_B) * TILE_B

    # Zero-pad everything to (8,128)-aligned, lane-dense shapes.  Padded rows /
    # columns are exact zeros everywhere (weights, biases, inputs), so they
    # contribute nothing to the valid outputs and are sliced off at the end.
    x_p = _pad2(hyper_x, B_pad, IN_P).astype(jnp.bfloat16)
    w1_p = _pad2(w1, IN_P, HID_P).astype(jnp.bfloat16)
    w2_p = _pad2(w2, HID_P, HID_P).astype(jnp.bfloat16)
    w3_p = _pad2(w3, HID_P, OUT_P).astype(jnp.bfloat16)
    b1_p = _pad2(b1, 1, HID_P)
    b2_p = _pad2(b2, 1, HID_P)
    b3_p = _pad2(b3, 1, OUT_P)

    # Constant index_map -> operand is DMA'd once and stays resident in VMEM
    # across all grid steps.
    resident = lambda shape: pl.BlockSpec(shape, lambda i: (0,) * len(shape))

    out = pl.pallas_call(
        hyper_stack_kernel,
        out_shape=jax.ShapeDtypeStruct((B_pad, OUT_P), jnp.float32),
        grid=(B_pad // TILE_B,),
        in_specs=[
            pl.BlockSpec((TILE_B, IN_P), lambda i: (i, 0)),   # x streams
            resident((IN_P, HID_P)), resident((1, HID_P)),    # layer 1
            resident((HID_P, HID_P)), resident((1, HID_P)),   # layer 2
            resident((HID_P, OUT_P)), resident((1, OUT_P)),   # layer 3
        ],
        out_specs=pl.BlockSpec((TILE_B, OUT_P), lambda i: (i, 0)),
        compiler_params=pltpu.CompilerParams(
            dimension_semantics=("parallel",)),   # megacore split on v7x
    )(x_p, w1_p, b1_p, w2_p, b2_p, w3_p, b3_p)

    return out[:B, :OUT_F]


def init_params(key):
    """Deterministic init mimicking torch.nn.Linear (uniform +/- 1/sqrt(fan_in)).

    Weights stored as (in_features, out_features); biases as (1, out)."""
    def linear(k, fan_in, fan_out):
        kw, kb = jax.random.split(k)
        bound = 1.0 / jnp.sqrt(fan_in)
        w = jax.random.uniform(kw, (fan_in, fan_out), jnp.float32, -bound, bound)
        b = jax.random.uniform(kb, (1, fan_out), jnp.float32, -bound, bound)
        return w, b

    k1, k2, k3 = jax.random.split(key, 3)
    w1, b1 = linear(k1, IN_F, HID)
    w2, b2 = linear(k2, HID, HID)
    w3, b3 = linear(k3, HID, OUT_F)
    return (w1, b1, w2, b2, w3, b3)


def hyper_model_ref_bf16(hyper_x, params):
    """Pure-JAX reference using the same bf16-weight / f32-accumulate recipe."""
    w1, b1, w2, b2, w3, b3 = params
    x = hyper_x.astype(jnp.bfloat16)
    h = jnp.dot(x, w1.astype(jnp.bfloat16),
                preferred_element_type=jnp.float32) + b1
    h = jnp.maximum(h, 0.0).astype(jnp.bfloat16)
    h = jnp.dot(h, w2.astype(jnp.bfloat16),
                preferred_element_type=jnp.float32) + b2
    h = jnp.maximum(h, 0.0).astype(jnp.bfloat16)
    return jnp.dot(h, w3.astype(jnp.bfloat16),
                   preferred_element_type=jnp.float32) + b3


def hyper_model_ref_f32(hyper_x, params):
    """Full-precision reference of the same hyper_stack forward."""
    w1, b1, w2, b2, w3, b3 = params
    h = jnp.maximum(hyper_x @ w1 + b1, 0.0)
    h = jnp.maximum(h @ w2 + b2, 0.0)
    return h @ w3 + b3


if __name__ == "__main__":
    key = jax.random.PRNGKey(0)
    k_x, k_p = jax.random.split(key)

    hyper_x = jax.random.normal(k_x, (BATCH, IN_F), jnp.float32)
    params = init_params(k_p)

    out = hyper_model_forward(hyper_x, params)
    out = jax.block_until_ready(out)

    assert out.shape == (BATCH, OUT_F)

    ref_bf16 = hyper_model_ref_bf16(hyper_x, params)
    ref_f32 = hyper_model_ref_f32(hyper_x, params)
    assert jnp.allclose(out, ref_bf16, atol=1e-3, rtol=1e-3)
    assert jnp.allclose(out, ref_f32, atol=5e-2, rtol=5e-2)

    print("KERNEL_OK")
</pallas_src>

<mosaic_0001>
module attributes {stable_mosaic.version = 11 : i64} {
  func.func @hyper_stack_kernel(%arg0: i32, %arg1: memref<128x128xbf16, #tpu.memory_space<vmem>>, %arg2: memref<128x128xbf16, #tpu.memory_space<vmem>>, %arg3: memref<1x128xf32, #tpu.memory_space<vmem>>, %arg4: memref<128x128xbf16, #tpu.memory_space<vmem>>, %arg5: memref<1x128xf32, #tpu.memory_space<vmem>>, %arg6: memref<128x128xbf16, #tpu.memory_space<vmem>>, %arg7: memref<1x128xf32, #tpu.memory_space<vmem>>, %arg8: memref<128x128xf32, #tpu.memory_space<vmem>>) attributes {dimension_semantics = [#tpu.dimension_semantics<parallel>], iteration_bounds = array<i64: 2>, scalar_prefetch = 0 : i64, scratch_operands = 0 : i64, tpu.core_type = #tpu.core_type<tc>, window_params = [{transform_indices = @transform_0, window_bounds = array<i64: 128, 128>}, {pipeline_mode = #tpu.pipeline_mode<synchronous>, transform_indices = @transform_1, window_bounds = array<i64: 128, 128>}, {pipeline_mode = #tpu.pipeline_mode<synchronous>, transform_indices = @transform_2, window_bounds = array<i64: 1, 128>}, {pipeline_mode = #tpu.pipeline_mode<synchronous>, transform_indices = @transform_3, window_bounds = array<i64: 128, 128>}, {pipeline_mode = #tpu.pipeline_mode<synchronous>, transform_indices = @transform_4, window_bounds = array<i64: 1, 128>}, {pipeline_mode = #tpu.pipeline_mode<synchronous>, transform_indices = @transform_5, window_bounds = array<i64: 128, 128>}, {pipeline_mode = #tpu.pipeline_mode<synchronous>, transform_indices = @transform_6, window_bounds = array<i64: 1, 128>}, {transform_indices = @transform_7, window_bounds = array<i64: 128, 128>}]} {
    %c0 = arith.constant 0 : index
    %c0_0 = arith.constant 0 : index
    %0 = vector.load %arg1[%c0, %c0_0] : memref<128x128xbf16, #tpu.memory_space<vmem>>, vector<128x128xbf16>
    %c0_1 = arith.constant 0 : index
    %c0_2 = arith.constant 0 : index
    %1 = vector.load %arg2[%c0_1, %c0_2] : memref<128x128xbf16, #tpu.memory_space<vmem>>, vector<128x128xbf16>
    %cst = arith.constant dense<0.000000e+00> : vector<128x128xf32>
    %2 = tpu.matmul %0, %1, %cst {dimension_numbers = #tpu.dot_dimension_numbers<[1], [0], [0], [1], [0, 0, 1, 1], [], []>} : vector<128x128xbf16>, vector<128x128xbf16>, vector<128x128xf32> -> vector<128x128xf32>
    %c0_3 = arith.constant 0 : index
    %c0_4 = arith.constant 0 : index
    %3 = vector.load %arg3[%c0_3, %c0_4] : memref<1x128xf32, #tpu.memory_space<vmem>>, vector<1x128xf32>
    %4 = vector.broadcast %3 : vector<1x128xf32> to vector<128x128xf32>
    %5 = arith.addf %2, %4 : vector<128x128xf32>
    %cst_5 = arith.constant 0.000000e+00 : f32
    %6 = vector.broadcast %cst_5 : f32 to vector<128x128xf32>
    %7 = arith.maximumf %5, %6 : vector<128x128xf32>
    %8 = arith.truncf %7 : vector<128x128xf32> to vector<128x128xbf16>
    %c0_6 = arith.constant 0 : index
    %c0_7 = arith.constant 0 : index
    %9 = vector.load %arg4[%c0_6, %c0_7] : memref<128x128xbf16, #tpu.memory_space<vmem>>, vector<128x128xbf16>
    %cst_8 = arith.constant dense<0.000000e+00> : vector<128x128xf32>
    %10 = tpu.matmul %8, %9, %cst_8 {dimension_numbers = #tpu.dot_dimension_numbers<[1], [0], [0], [1], [0, 0, 1, 1], [], []>} : vector<128x128xbf16>, vector<128x128xbf16>, vector<128x128xf32> -> vector<128x128xf32>
    %c0_9 = arith.constant 0 : index
    %c0_10 = arith.constant 0 : index
    %11 = vector.load %arg5[%c0_9, %c0_10] : memref<1x128xf32, #tpu.memory_space<vmem>>, vector<1x128xf32>
    %12 = vector.broadcast %11 : vector<1x128xf32> to vector<128x128xf32>
    %13 = arith.addf %10, %12 : vector<128x128xf32>
    %cst_11 = arith.constant 0.000000e+00 : f32
    %14 = vector.broadcast %cst_11 : f32 to vector<128x128xf32>
    %15 = arith.maximumf %13, %14 : vector<128x128xf32>
    %16 = arith.truncf %15 : vector<128x128xf32> to vector<128x128xbf16>
    %c0_12 = arith.constant 0 : index
    %c0_13 = arith.constant 0 : index
    %17 = vector.load %arg6[%c0_12, %c0_13] : memref<128x128xbf16, #tpu.memory_space<vmem>>, vector<128x128xbf16>
    %cst_14 = arith.constant dense<0.000000e+00> : vector<128x128xf32>
    %18 = tpu.matmul %16, %17, %cst_14 {dimension_numbers = #tpu.dot_dimension_numbers<[1], [0], [0], [1], [0, 0, 1, 1], [], []>} : vector<128x128xbf16>, vector<128x128xbf16>, vector<128x128xf32> -> vector<128x128xf32>
    %c0_15 = arith.constant 0 : index
    %c0_16 = arith.constant 0 : index
    %19 = vector.load %arg7[%c0_15, %c0_16] : memref<1x128xf32, #tpu.memory_space<vmem>>, vector<1x128xf32>
    %20 = vector.broadcast %19 : vector<1x128xf32> to vector<128x128xf32>
    %21 = arith.addf %18, %20 : vector<128x128xf32>
    %c0_17 = arith.constant 0 : index
    %c0_18 = arith.constant 0 : index
    %22 = vector.load %arg8[%c0_17, %c0_18] : memref<128x128xf32, #tpu.memory_space<vmem>>, vector<128x128xf32>
    tpu.vector_store %arg8[%c0_17, %c0_18], %21 {strides = array<i32>} : memref<128x128xf32, #tpu.memory_space<vmem>>, vector<128x128xf32>,
    return
  }
  func.func @transform_0(%arg0: i32) -> (i32, i32) {
    %c0_i32 = arith.constant 0 : i32
    %c0_i32_0 = arith.constant 0 : i32
    return %arg0, %c0_i32 : i32, i32
  }
  func.func @transform_1(%arg0: i32) -> (i32, i32) {
    %c0_i32 = arith.constant 0 : i32
    %c0_i32_0 = arith.constant 0 : i32
    %c0_i32_1 = arith.constant 0 : i32
    return %c0_i32, %c0_i32_0 : i32, i32
  }
  func.func @transform_2(%arg0: i32) -> (i32, i32) {
    %c0_i32 = arith.constant 0 : i32
    %c0_i32_0 = arith.constant 0 : i32
    %c0_i32_1 = arith.constant 0 : i32
    return %c0_i32, %c0_i32_0 : i32, i32
  }
  func.func @transform_3(%arg0: i32) -> (i32, i32) {
    %c0_i32 = arith.constant 0 : i32
    %c0_i32_0 = arith.constant 0 : i32
    %c0_i32_1 = arith.constant 0 : i32
    return %c0_i32, %c0_i32_0 : i32, i32
  }
  func.func @transform_4(%arg0: i32) -> (i32, i32) {
    %c0_i32 = arith.constant 0 : i32
    %c0_i32_0 = arith.constant 0 : i32
    %c0_i32_1 = arith.constant 0 : i32
    return %c0_i32, %c0_i32_0 : i32, i32
  }
  func.func @transform_5(%arg0: i32) -> (i32, i32) {
    %c0_i32 = arith.constant 0 : i32
    %c0_i32_0 = arith.constant 0 : i32
    %c0_i32_1 = arith.constant 0 : i32
    return %c0_i32, %c0_i32_0 : i32, i32
  }
  func.func @transform_6(%arg0: i32) -> (i32, i32) {
    %c0_i32 = arith.constant 0 : i32
    %c0_i32_0 = arith.constant 0 : i32
    %c0_i32_1 = arith.constant 0 : i32
    return %c0_i32, %c0_i32_0 : i32, i32
  }
  func.func @transform_7(%arg0: i32) -> (i32, i32) {
    %c0_i32 = arith.constant 0 : i32
    %c0_i32_0 = arith.constant 0 : i32
    return %arg0, %c0_i32 : i32, i32
  }
}

</mosaic_0001>

<bundles_post_ra>
// kernel: hyper_model_forward.1
= control target key start
LH: loop header
LB: loop body
LE: loop exit
PB: predicated region body
PF: predicated region fallthrough
CT: control target
= control target key end

     0   :  { %s1071_s24 = smov 0   ;;  %s1209_s0 = inlined_call_operand.vmem [shape: bf16[256,128], index: 0, kind: input, shape index: {}]   ;;  %s1210_s1 = inlined_call_operand.vmem [shape: bf16[128,128], index: 1, kind: input, shape index: {}]   ;;  %s1211_s2 = inlined_call_operand.vmem [shape: f32[1,128], index: 2, kind: input, shape index: {}]   ;;  %s1212_s3 = inlined_call_operand.vmem [shape: bf16[128,128], index: 3, kind: input, shape index: {}]   ;;  %s1213_s4 = inlined_call_operand.vmem [shape: f32[1,128], index: 4, kind: input, shape index: {}]   ;;  %s1214_s5 = inlined_call_operand.vmem [shape: bf16[128,128], index: 5, kind: input, shape index: {}]   ;;  %s1215_s6 = inlined_call_operand.vmem [shape: f32[1,128], index: 6, kind: input, shape index: {}]   ;;  %s1216_s7 = inlined_call_operand.vmem [shape: f32[256,128], index: 7, kind: output, shape index: {}]  }
   0x1 LB: > { %s817_s25 = sadd.s32 4294967295, %s1029_s24   ;;  %p821_p0 = scmp.ge.s32.totalorder %s1029_s24, 1  ;;  %s1029_s24 = sphi %s1071_s24, %s17_s24  }
   0x2   : > { %p238_p1 = scmp.lt.s32.totalorder %s1029_s24, 3 }
   0x4   : > { %p239_p2 = pnand %p821_p0, %p238_p1 }
   0x5   : > { %s822_s11 = sshll.u32 (!%p239_p2), %s817_s25, 4 }
   0x6   : > { %242 = sbr.rel (%p239_p2) target bundleno = 546 (0x222), region = 48  ;;  %p271_p3 = scmp.lt.s32.totalorder (!%p239_p2), %s822_s11, 31 }
   0xb   : > { %v971_v0 = vld [vmem:[%s1210_s1 + $0x38] sm:$0xff]  ;;  %v970_v1 = vld [vmem:[%s1210_s1 + $0x30] sm:$0xff]  ;;  %v969_v2 = vld [vmem:[%s1210_s1 + $0x28] sm:$0xff]  ;;  %s1218_s11 = smov (!%p271_p3, %s822_s11), 31 }
   0xc   : > { %414 = vmatpush.bf16.msra.mxu0 %v971_v0  ;;  %988 = vmatpush.bf16.msra.mxu3 %v971_v0  ;;  %v968_v3 = vld [vmem:[%s1210_s1 + $0x20] sm:$0xff]  ;;  %v967_v4 = vld [vmem:[%s1210_s1 + $0x18] sm:$0xff]  ;;  %v966_v5 = vld [vmem:[%s1210_s1 + $0x10] sm:$0xff]  ;;  %s823_s18 = sshll.u32 %s1218_s11, 2 }
   0xd   : > { %v965_v6 = vld [vmem:[%s1210_s1 + $0x8] sm:$0xff]  ;;  %v964_v7 = vld [vmem:[%s1210_s1] sm:$0xff]  ;;  %s274_s23 = scalar_lea.vmem %s1209_s0, %s823_s18  ;;  %v979_v14 = vld [vmem:[%s1212_s3 + $0x38] sm:$0xff]  ;;  %s825_s18 = sshll.u32 %s1218_s11, 3 }
   0xe   : > { %v956_v8 = vld [vmem:[%s274_s23] sm:$0xff]  ;;  %v962_v9 = vld [vmem:[%s274_s23 + $0x30] sm:$0xff]  ;;  %v957_v10 = vld [vmem:[%s274_s23 + $0x8] sm:$0xff]  ;;  %555 = vmatpush.bf16.msra.mxu1 %v979_v14 }
   0xf   : > { %v963_v11 = vld [vmem:[%s274_s23 + $0x38] sm:$0xff]  ;;  %v958_v12 = vld [vmem:[%s274_s23 + $0x10] sm:$0xff]  ;;  %v977_v16 = vld [vmem:[%s1212_s3 + $0x28] sm:$0xff] }
  0x10   : > { %415 = vmatpush.bf16.msra.mxu0 %v970_v1  ;;  %989 = vmatpush.bf16.msra.mxu3 %v970_v1  ;;  %v959_v13 = vld [vmem:[%s274_s23 + $0x18] sm:$0xff]  ;;  %v978_v15 = vld [vmem:[%s1212_s3 + $0x30] sm:$0xff]  ;;  %v976_v17 = vld [vmem:[%s1212_s3 + $0x20] sm:$0xff] }
  0x11   : > { %v960_v18 = vld [vmem:[%s274_s23 + $0x20] sm:$0xff]  ;;  %v961_v19 = vld [vmem:[%s274_s23 + $0x28] sm:$0xff]  ;;  %v975_v20 = vld [vmem:[%s1212_s3 + $0x18] sm:$0xff]  ;;  %s1188_s23 = scalar_lea.vmem %s1216_s7, %s825_s18 }
  0x12   : > { %556 = vmatpush.bf16.msra.mxu1 %v978_v15  ;;  %v974_v21 = vld [vmem:[%s1212_s3 + $0x10] sm:$0xff]  ;;  %v973_v22 = vld [vmem:[%s1212_s3 + $0x8] sm:$0xff]  ;;  %v972_v23 = vld [vmem:[%s1212_s3] sm:$0xff] }
  0x13   : > { %v1136_v25 = vld [vmem:[%s1211_s2] ss:$0 sm:$0xff] }
  0x14   : > { %416 = vmatpush.bf16.msra.mxu0 %v969_v2  ;;  %990 = vmatpush.bf16.msra.mxu3 %v969_v2 }
  0x16   : > { %557 = vmatpush.bf16.msra.mxu1 %v977_v16 }
  0x18   : > { %417 = vmatpush.bf16.msra.mxu0 %v968_v3  ;;  %991 = vmatpush.bf16.msra.mxu3 %v968_v3  ;;  %v987_v3 = vld [vmem:[%s1214_s5 + $0x38] sm:$0xff] }
  0x19   : > { %696 = vmatpush.bf16.msra.mxu2 %v987_v3 }
  0x1a   : > { %558 = vmatpush.bf16.msra.mxu1 %v976_v17 }
  0x1c   : > { %418 = vmatpush.bf16.msra.mxu0 %v967_v4  ;;  %992 = vmatpush.bf16.msra.mxu3 %v967_v4 }
  0x1e   : > { %559 = vmatpush.bf16.msra.mxu1 %v975_v20 }
  0x20   : > { %419 = vmatpush.bf16.msra.mxu0 %v966_v5  ;;  %993 = vmatpush.bf16.msra.mxu3 %v966_v5  ;;  %v986_v5 = vld [vmem:[%s1214_s5 + $0x30] sm:$0xff] }
  0x21   : > { %697 = vmatpush.bf16.msra.mxu2 %v986_v5 }
  0x22   : > { %560 = vmatpush.bf16.msra.mxu1 %v974_v21 }
  0x24   : > { %420 = vmatpush.bf16.msra.mxu0 %v965_v6  ;;  %994 = vmatpush.bf16.msra.mxu3 %v965_v6  ;;  %v985_v6 = vld [vmem:[%s1214_s5 + $0x28] sm:$0xff] }
  0x25   : > { %698 = vmatpush.bf16.msra.mxu2 %v985_v6 }
  0x26   : > { %561 = vmatpush.bf16.msra.mxu1 %v973_v22 }
  0x28   : > { %421 = vmatpush.bf16.msra.mxu0 %v964_v7  ;;  %995 = vmatpush.bf16.msra.mxu3 %v964_v7 }
  0x2a   : > { %562 = vmatpush.bf16.msra.mxu1 %v972_v23 }
  0x2b   : > { %422 = vmatmul.bf16.vlgmr.msra.gmra.mxu0 %v956_v8  ;;  %452 = vmatmul.bf16.vlgmr.msra.gmra.mxu3 %v962_v9 }
  0x2c   : > { %996 = vmatpush.bf16.msrb.mxu3 %v979_v14 }
  0x30   : > { %997 = vmatpush.bf16.msrb.mxu3 %v978_v15 }
  0x34   : > { %998 = vmatpush.bf16.msrb.mxu3 %v977_v16 }
  0x38   : > { %999 = vmatpush.bf16.msrb.mxu3 %v976_v17 }
  0x3b   : > { %427 = vmatmul.bf16.gmra.mxu0 %v957_v10  ;;  %457 = vmatmul.bf16.gmra.mxu3 %v963_v11  ;;  %v984_v10 = vld [vmem:[%s1214_s5 + $0x20] sm:$0xff] }
  0x3c   : > { %1000 = vmatpush.bf16.msrb.mxu3 %v975_v20  ;;  %699 = vmatpush.bf16.msra.mxu2 %v984_v10 }
  0x40   : > { %1001 = vmatpush.bf16.msrb.mxu3 %v974_v21  ;;  %v983_v21 = vld [vmem:[%s1214_s5 + $0x18] sm:$0xff] }
  0x41   : > { %700 = vmatpush.bf16.msra.mxu2 %v983_v21 }
  0x44   : > { %1002 = vmatpush.bf16.msrb.mxu3 %v973_v22  ;;  %v982_v22 = vld [vmem:[%s1214_s5 + $0x10] sm:$0xff] }
  0x45   : > { %701 = vmatpush.bf16.msra.mxu2 %v982_v22 }
  0x48   : > { %1003 = vmatpush.bf16.msrb.mxu3 %v972_v23  ;;  %v981_v23 = vld [vmem:[%s1214_s5 + $0x8] sm:$0xff] }
  0x49   : > { %702 = vmatpush.bf16.msra.mxu2 %v981_v23 }
  0x4b   : > { %432 = vmatmul.bf16.gmra.mxu0 %v958_v12 }
  0x4c   : > { %1004 = vmatpush.bf16.msra.mxu3 %v987_v3 }
  0x50   : > { %1005 = vmatpush.bf16.msra.mxu3 %v986_v5 }
  0x54   : > { %1006 = vmatpush.bf16.msra.mxu3 %v985_v6 }
  0x58   : > { %1007 = vmatpush.bf16.msra.mxu3 %v984_v10 }
  0x5b   : > { %437 = vmatmul.bf16.gmra.mxu0 %v959_v13 }
  0x5c   : > { %1008 = vmatpush.bf16.msra.mxu3 %v983_v21 }
  0x60   : > { %1009 = vmatpush.bf16.msra.mxu3 %v982_v22 }
  0x64   : > { %1010 = vmatpush.bf16.msra.mxu3 %v981_v23 }
  0x6b   : > { %442 = vmatmul.bf16.gmra.mxu0 %v960_v18 }
  0x7b   : > { %447 = vmatmul.bf16.gmra.mxu0 %v961_v19 }
  0xa8   : > { %v423_v24 = vpop.f32.mrf.mxu0 }
  0xa9   : > { %v424_v27 = vadd.f32 %v1136_v25, %v423_v24  ;;  %v980_v24 = vld [vmem:[%s1214_s5] sm:$0xff] }
  0xaa   : > { %703 = vmatpush.bf16.msra.mxu2 %v980_v24  ;;  %1011 = vmatpush.bf16.msra.mxu3 %v980_v24 }
  0xab   : > { %v463_v30 = vmax.f32 %v424_v27, 0.0 }
  0xae   : > { %v453_v26 = vpop.f32.mrf.mxu3 }
  0xaf   : > { %v454_v32 = vadd.f32 %v1136_v25, %v453_v26  ;;  %v1021_v26 = vld [vmem:[%s1213_s4] ss:$0 sm:$0xff] }
  0xb0   : > { %v425_v28 = vpop.f32.mrf.mxu0 }
  0xb1   : > { %v426_v29 = vadd.f32 %v1136_v25, %v425_v28  ;;  %v475_v35 = vmax.f32 %v454_v32, 0.0 }
  0xb3   : > { %v464_v31 = vmax.f32 %v426_v29, 0.0 }
  0xb5   : > { %v479_v33 = vpack.c.bf16 %v464_v31, %v463_v30 }
  0xb6   : > { %v455_v34 = vpop.f32.mrf.mxu3 }
  0xb7   : > { %563 = vmatmul.bf16.vlgmr.msra.gmra.mxu1 %v479_v33  ;;  %v456_v36 = vadd.f32 %v1136_v25, %v455_v34 }
  0xb8   : > { %v428_v37 = vpop.f32.mrf.mxu0 }
  0xb9   : > { %v476_v38 = vmax.f32 %v456_v36, 0.0  ;;  %v429_v41 = vadd.f32 %v1136_v25, %v428_v37 }
  0xbb   : > { %v485_v39 = vpack.c.bf16 %v476_v38, %v475_v35  ;;  %v465_v44 = vmax.f32 %v429_v41, 0.0 }
  0xbd   : > { %593 = vmatmul.bf16.vlgmr.msrb.gmra.mxu3 %v485_v39 }
  0xbe   : > { %v458_v40 = vpop.f32.mrf.mxu3 }
  0xbf   : > { %v459_v46 = vadd.f32 %v1136_v25, %v458_v40 }
  0xc0   : > { %v430_v42 = vpop.f32.mrf.mxu0 }
  0xc1   : > { %v431_v43 = vadd.f32 %v1136_v25, %v430_v42  ;;  %v477_v49 = vmax.f32 %v459_v46, 0.0 }
  0xc3   : > { %v466_v45 = vmax.f32 %v431_v43, 0.0 }
  0xc5   : > { %v480_v47 = vpack.c.bf16 %v466_v45, %v465_v44 }
  0xc6   : > { %v460_v48 = vpop.f32.mrf.mxu3 }
  0xc7   : > { %568 = vmatmul.bf16.gmra.mxu1 %v480_v47  ;;  %v461_v50 = vadd.f32 %v1136_v25, %v460_v48 }
  0xc8   : > { %v433_v51 = vpop.f32.mrf.mxu0 }
  0xc9   : > { %v478_v52 = vmax.f32 %v461_v50, 0.0  ;;  %v434_v54 = vadd.f32 %v1136_v25, %v433_v51 }
  0xcb   : > { %v486_v53 = vpack.c.bf16 %v478_v52, %v477_v49  ;;  %v467_v57 = vmax.f32 %v434_v54, 0.0 }
  0xcd   : > { %598 = vmatmul.bf16.gmra.mxu3 %v486_v53 }
  0xd0   : > { %v435_v55 = vpop.f32.mrf.mxu0 }
  0xd1   : > { %v436_v56 = vadd.f32 %v1136_v25, %v435_v55 }
  0xd3   : > { %v468_v58 = vmax.f32 %v436_v56, 0.0 }
  0xd5   : > { %v481_v59 = vpack.c.bf16 %v468_v58, %v467_v57 }
  0xd7   : > { %573 = vmatmul.bf16.gmra.mxu1 %v481_v59 }
  0xd8   : > { %v438_v60 = vpop.f32.mrf.mxu0 }
  0xd9   : > { %v439_v61 = vadd.f32 %v1136_v25, %v438_v60 }
  0xdb   : > { %v469_v0 = vmax.f32 %v439_v61, 0.0 }
  0xe0   : > { %v440_v62 = vpop.f32.mrf.mxu0 }
  0xe1   : > { %v441_v63 = vadd.f32 %v1136_v25, %v440_v62 }
  0xe3   : > { %v470_v1 = vmax.f32 %v441_v63, 0.0 }
  0xe5   : > { %v482_v2 = vpack.c.bf16 %v470_v1, %v469_v0 }
  0xe7   : > { %578 = vmatmul.bf16.gmra.mxu1 %v482_v2 }
  0xe8   : > { %v443_v4 = vpop.f32.mrf.mxu0 }
  0xe9   : > { %v444_v7 = vadd.f32 %v1136_v25, %v443_v4 }
  0xeb   : > { %v471_v11 = vmax.f32 %v444_v7, 0.0 }
  0xf0   : > { %v445_v8 = vpop.f32.mrf.mxu0 }
  0xf1   : > { %v446_v9 = vadd.f32 %v1136_v25, %v445_v8 }
  0xf3   : > { %v472_v12 = vmax.f32 %v446_v9, 0.0 }
  0xf5   : > { %v483_v13 = vpack.c.bf16 %v472_v12, %v471_v11 }
  0xf7   : > { %583 = vmatmul.bf16.gmra.mxu1 %v483_v13 }
  0xf8   : > { %v448_v14 = vpop.f32.mrf.mxu0 }
  0xf9   : > { %v449_v15 = vadd.f32 %v1136_v25, %v448_v14 }
  0xfb   : > { %v473_v18 = vmax.f32 %v449_v15, 0.0 }
 0x100   : > { %v450_v16 = vpop.f32.mrf.mxu0 }
 0x101   : > { %v451_v17 = vadd.f32 %v1136_v25, %v450_v16 }
 0x103   : > { %v474_v19 = vmax.f32 %v451_v17, 0.0 }
 0x105   : > { %v484_v20 = vpack.c.bf16 %v474_v19, %v473_v18  ;;  %v1022_v18 = vld [vmem:[%s1215_s6] ss:$0 sm:$0xff] }
 0x107   : > { %588 = vmatmul.bf16.gmra.mxu1 %v484_v20 }
 0x134   : > { %v564_v25 = vpop.f32.mrf.mxu1 }
 0x135   : > { %v565_v27 = vadd.f32 %v1021_v26, %v564_v25 }
 0x137   : > { %v604_v30 = vmax.f32 %v565_v27, 0.0 }
 0x13c   : > { %v566_v28 = vpop.f32.mrf.mxu1 }
 0x13d   : > { %v567_v29 = vadd.f32 %v1021_v26, %v566_v28 }
 0x13f   : > { %v605_v31 = vmax.f32 %v567_v29, 0.0 }
 0x140   : > { %v594_v32 = vpop.f32.mrf.mxu3 }
 0x141   : > { %v620_v33 = vpack.c.bf16 %v605_v31, %v604_v30  ;;  %v595_v35 = vadd.f32 %v1021_v26, %v594_v32 }
 0x143   : > { %704 = vmatmul.bf16.vlgmr.msra.gmra.mxu2 %v620_v33  ;;  %v616_v37 = vmax.f32 %v595_v35, 0.0 }
 0x144   : > { %v569_v34 = vpop.f32.mrf.mxu1 }
 0x145   : > { %v570_v39 = vadd.f32 %v1021_v26, %v569_v34 }
 0x147   : > { %v606_v44 = vmax.f32 %v570_v39, 0.0 }
 0x148   : > { %v596_v36 = vpop.f32.mrf.mxu3 }
 0x149   : > { %v597_v38 = vadd.f32 %v1021_v26, %v596_v36 }
 0x14b   : > { %v617_v40 = vmax.f32 %v597_v38, 0.0 }
 0x14c   : > { %v571_v41 = vpop.f32.mrf.mxu1 }
 0x14d   : > { %v572_v42 = vadd.f32 %v1021_v26, %v571_v41  ;;  %v626_v43 = vpack.c.bf16 %v617_v40, %v616_v37 }
 0x14f   : > { %v607_v45 = vmax.f32 %v572_v42, 0.0  ;;  %734 = vmatmul.bf16.vlgmr.msra.gmra.mxu3 %v626_v43 }
 0x150   : > { %v599_v46 = vpop.f32.mrf.mxu3 }
 0x151   : > { %v621_v47 = vpack.c.bf16 %v607_v45, %v606_v44  ;;  %v600_v49 = vadd.f32 %v1021_v26, %v599_v46 }
 0x153   : > { %709 = vmatmul.bf16.gmra.mxu2 %v621_v47  ;;  %v618_v51 = vmax.f32 %v600_v49, 0.0 }
 0x154   : > { %v574_v48 = vpop.f32.mrf.mxu1 }
 0x155   : > { %v575_v53 = vadd.f32 %v1021_v26, %v574_v48 }
 0x157   : > { %v608_v58 = vmax.f32 %v575_v53, 0.0 }
 0x158   : > { %v601_v50 = vpop.f32.mrf.mxu3 }
 0x159   : > { %v602_v52 = vadd.f32 %v1021_v26, %v601_v50 }
 0x15b   : > { %v619_v54 = vmax.f32 %v602_v52, 0.0 }
 0x15c   : > { %v576_v55 = vpop.f32.mrf.mxu1 }
 0x15d   : > { %v577_v56 = vadd.f32 %v1021_v26, %v576_v55  ;;  %v627_v57 = vpack.c.bf16 %v619_v54, %v618_v51 }
 0x15f   : > { %v609_v59 = vmax.f32 %v577_v56, 0.0  ;;  %739 = vmatmul.bf16.gmra.mxu3 %v627_v57 }
 0x161   : > { %v622_v60 = vpack.c.bf16 %v609_v59, %v608_v58 }
 0x163   : > { %714 = vmatmul.bf16.gmra.mxu2 %v622_v60 }
 0x164   : > { %v579_v61 = vpop.f32.mrf.mxu1 }
 0x165   : > { %v580_v62 = vadd.f32 %v1021_v26, %v579_v61 }
 0x167   : > { %v610_v1 = vmax.f32 %v580_v62, 0.0 }
 0x16c   : > { %v581_v63 = vpop.f32.mrf.mxu1 }
 0x16d   : > { %v582_v0 = vadd.f32 %v1021_v26, %v581_v63 }
 0x16f   : > { %v611_v2 = vmax.f32 %v582_v0, 0.0 }
 0x171   : > { %v623_v3 = vpack.c.bf16 %v611_v2, %v610_v1 }
 0x173   : > { %719 = vmatmul.bf16.gmra.mxu2 %v623_v3 }
 0x174   : > { %v584_v4 = vpop.f32.mrf.mxu1 }
 0x175   : > { %v585_v5 = vadd.f32 %v1021_v26, %v584_v4 }
 0x177   : > { %v612_v8 = vmax.f32 %v585_v5, 0.0 }
 0x17c   : > { %v586_v6 = vpop.f32.mrf.mxu1 }
 0x17d   : > { %v587_v7 = vadd.f32 %v1021_v26, %v586_v6 }
 0x17f   : > { %v613_v9 = vmax.f32 %v587_v7, 0.0 }
 0x181   : > { %v624_v10 = vpack.c.bf16 %v613_v9, %v612_v8 }
 0x183   : > { %724 = vmatmul.bf16.gmra.mxu2 %v624_v10 }
 0x184   : > { %v589_v11 = vpop.f32.mrf.mxu1 }
 0x185   : > { %v590_v12 = vadd.f32 %v1021_v26, %v589_v11 }
 0x187   : > { %v614_v15 = vmax.f32 %v590_v12, 0.0 }
 0x18c   : > { %v591_v13 = vpop.f32.mrf.mxu1 }
 0x18d   : > { %v592_v14 = vadd.f32 %v1021_v26, %v591_v13 }
 0x18f   : > { %v615_v16 = vmax.f32 %v592_v14, 0.0 }
 0x191   : > { %v625_v17 = vpack.c.bf16 %v615_v16, %v614_v15 }
 0x193   : > { %729 = vmatmul.bf16.gmra.mxu2 %v625_v17 }
 0x1c6   : > { %v705_v19 = vpop.f32.mrf.mxu2 }
 0x1c7   : > { %v706_v20 = vadd.f32 %v1022_v18, %v705_v19 }
 0x1c9   : > { %745 = vst [vmem:[%s1188_s23] sm:$0xff] %v706_v20 }
 0x1ce   : > { %v707_v21 = vpop.f32.mrf.mxu2 }
 0x1cf   : > { %v708_v22 = vadd.f32 %v1022_v18, %v707_v21 }
 0x1d1   : > { %746 = vst [vmem:[%s1188_s23 + $0x8] sm:$0xff] %v708_v22 }
 0x1d2   : > { %v735_v23 = vpop.f32.mrf.mxu3 }
 0x1d3   : > { %v736_v24 = vadd.f32 %v1022_v18, %v735_v23 }
 0x1d5   : > { %757 = vst [vmem:[%s1188_s23 + $0x60] sm:$0xff] %v736_v24 }
 0x1d6   : > { %v710_v25 = vpop.f32.mrf.mxu2 }
 0x1d7   : > { %v711_v26 = vadd.f32 %v1022_v18, %v710_v25 }
 0x1d9   : > { %747 = vst [vmem:[%s1188_s23 + $0x10] sm:$0xff] %v711_v26 }
 0x1da   : > { %v737_v27 = vpop.f32.mrf.mxu3 }
 0x1db   : > { %v738_v28 = vadd.f32 %v1022_v18, %v737_v27 }
 0x1dd   : > { %758 = vst [vmem:[%s1188_s23 + $0x68] sm:$0xff] %v738_v28 }
 0x1de   : > { %v712_v29 = vpop.f32.mrf.mxu2 }
 0x1df   : > { %v713_v30 = vadd.f32 %v1022_v18, %v712_v29 }
 0x1e1   : > { %748 = vst [vmem:[%s1188_s23 + $0x18] sm:$0xff] %v713_v30 }
 0x1e2   : > { %v740_v31 = vpop.f32.mrf.mxu3 }
 0x1e3   : > { %v741_v32 = vadd.f32 %v1022_v18, %v740_v31 }
 0x1e5   : > { %759 = vst [vmem:[%s1188_s23 + $0x70] sm:$0xff] %v741_v32 }
 0x1e6   : > { %v715_v33 = vpop.f32.mrf.mxu2 }
 0x1e7   : > { %v716_v34 = vadd.f32 %v1022_v18, %v715_v33 }
 0x1e9   : > { %749 = vst [vmem:[%s1188_s23 + $0x20] sm:$0xff] %v716_v34 }
 0x1ea   : > { %v742_v35 = vpop.f32.mrf.mxu3 }
 0x1eb   : > { %v743_v36 = vadd.f32 %v1022_v18, %v742_v35 }
 0x1ed   : > { %760 = vst [vmem:[%s1188_s23 + $0x78] sm:$0xff] %v743_v36 }
 0x1ee   : > { %v717_v37 = vpop.f32.mrf.mxu2 }
 0x1ef   : > { %v718_v38 = vadd.f32 %v1022_v18, %v717_v37 }
 0x1f1   : > { %750 = vst [vmem:[%s1188_s23 + $0x28] sm:$0xff] %v718_v38 }
 0x1f6   : > { %v720_v39 = vpop.f32.mrf.mxu2 }
 0x1f7   : > { %v721_v40 = vadd.f32 %v1022_v18, %v720_v39 }
 0x1f9   : > { %751 = vst [vmem:[%s1188_s23 + $0x30] sm:$0xff] %v721_v40 }
 0x1fe   : > { %v722_v41 = vpop.f32.mrf.mxu2 }
 0x1ff   : > { %v723_v42 = vadd.f32 %v1022_v18, %v722_v41 }
 0x201   : > { %752 = vst [vmem:[%s1188_s23 + $0x38] sm:$0xff] %v723_v42 }
 0x206   : > { %v725_v43 = vpop.f32.mrf.mxu2 }
 0x207   : > { %v726_v44 = vadd.f32 %v1022_v18, %v725_v43 }
 0x209   : > { %753 = vst [vmem:[%s1188_s23 + $0x40] sm:$0xff] %v726_v44 }
 0x20e   : > { %v727_v45 = vpop.f32.mrf.mxu2 }
 0x20f   : > { %v728_v46 = vadd.f32 %v1022_v18, %v727_v45 }
 0x211   : > { %754 = vst [vmem:[%s1188_s23 + $0x48] sm:$0xff] %v728_v46 }
 0x216   : > { %v730_v47 = vpop.f32.mrf.mxu2 }
 0x217   : > { %v731_v48 = vadd.f32 %v1022_v18, %v730_v47 }
 0x219   : > { %755 = vst [vmem:[%s1188_s23 + $0x50] sm:$0xff] %v731_v48 }
 0x21e   : > { %v732_v49 = vpop.f32.mrf.mxu2 }
 0x21f   : > { %v733_v50 = vadd.f32 %v1022_v18, %v732_v49 }
 0x221   : > { %756 = vst [vmem:[%s1188_s23 + $0x58] sm:$0xff] %v733_v50 }
 0x222 PF: > { %s17_s24 = sadd.s32 1, %s1029_s24  }
 0x223   : > { %p14_p4 = scmp.ge.s32.totalorder %s17_s24, 4  }
 0x225   :  { %16 = sbr.rel (!%p14_p4) target bundleno = 1 (0x1), region = 78 }

</bundles_post_ra>
